<compile_context>
chip_gen: v7x
topology: tpu7x:2x2x1
jax: 0.10.0
libtpu: 0.0.40
codegen_flags: <defaults>
</compile_context>

<pallas_src>
import functools

import jax
import jax.numpy as jnp
from jax.experimental import pallas as pl
from jax.experimental.pallas import tpu as pltpu


def _mha_single_token_kernel(inp_ref, ao_ref, wk_ref, bk_ref, wv_ref, bv_ref,
                             wq_ref, bq_ref, wo_ref, bo_ref, hmap_ref, out_ref,
                             *, inv_temperature, approx_recip):
    """One batch tile: (TB, input_dim) queries attend over (TB, S, attend_dim)."""
    tb, s_len, attend_dim = ao_ref.shape
    dk = wk_ref.shape[1]          # num_heads * key_dim
    dv = wv_ref.shape[1]          # num_heads * value_dim
    f32 = jnp.float32

    # ---- K / V projections: two large-M MXU matmuls over the whole tile --------
    # (separate wk / wv keeps both outputs lane-aligned; the reshape is
    # layout-preserving when S is a multiple of 8).
    x2d = ao_ref[...].reshape(tb * s_len, attend_dim)                 # (TB*S, A)
    keys = jnp.dot(x2d, wk_ref[...], preferred_element_type=f32)
    keys = keys + bk_ref[...].astype(f32)                             # (TB*S, Dk)
    vals = jnp.dot(x2d, wv_ref[...], preferred_element_type=f32)
    vals = vals + bv_ref[...].astype(f32)                             # (TB*S, Dv)

    # ---- Q projection (1/temperature folded into q) ----------------------------
    q = jnp.dot(inp_ref[...], wq_ref[...], preferred_element_type=f32)
    q = (q + bq_ref[...].astype(f32)) * inv_temperature               # (TB, Dk)

    # ---- per-head scores, expanded straight into the value lane layout ---------
    # scores[b, s, h*value_dim + j] = sum_d q[b, h*key_dim + d] * keys[b, s, h*key_dim + d]
    # One block-diagonal head-map matmul (MXU) -> lane-dense softmax operand; no
    # (TB, S, H) intermediate, no second expansion matmul, no per-head loop.
    prod = keys.reshape(tb, s_len, dk) * q[:, None, :]                # (TB, S, Dk) f32
    scores = jnp.dot(prod.reshape(tb * s_len, dk).astype(hmap_ref.dtype),
                     hmap_ref[...], preferred_element_type=f32)
    scores = scores.reshape(tb, s_len, dv)                            # (TB, S, Dv)

    # ---- softmax over the attend axis (f32, lane-dense) ------------------------
    # TODO(synk): attend_mask (masked_softmax) not wired in.
    m = jnp.max(scores, axis=1, keepdims=True)                        # (TB, 1, Dv)
    e = jnp.exp(scores - m)                                           # (TB, S, Dv)
    denom = jnp.sum(e, axis=1)                                        # (TB, Dv) per-head denom, lane-expanded

    # ---- attention-weighted value sum, normalized once at the end --------------
    ctx = jnp.sum(e * vals.reshape(tb, s_len, dv), axis=1)            # (TB, Dv)
    ctx = ctx * pl.reciprocal(denom, approx=approx_recip)             # (TB, Dv)

    # ---- output projection (wo zero-padded to lane-dense width) ----------------
    out = jnp.dot(ctx.astype(wo_ref.dtype), wo_ref[...],
                  preferred_element_type=f32)
    out_ref[...] = (out + bo_ref[...].astype(f32)).astype(out_ref.dtype)


def _vmem_budget():
    """Per-generation VMEM sizing.

    v7x-class chips have 64 MiB VMEM per TensorCore (and 2 TCs): conservative tile
    budget, 40 MiB scoped limit, and a >=2-grid-step cap so 'parallel' can shard
    across the two cores.  v5e / v6e have 128 MiB and a single TC: much larger
    tiles and scoped limit (the kernel is HBM-bandwidth-bound on attend_over).
    """
    try:
        cap = int(pltpu.get_tpu_info().vmem_capacity_bytes)
    except Exception:                      # unknown chip -> be conservative
        cap = 64 * 1024 * 1024
    if cap <= 64 * 1024 * 1024:            # v7x-class
        return 20 * 1024 * 1024, 40 * 1024 * 1024, True
    return 48 * 1024 * 1024, 96 * 1024 * 1024, False   # v5e / v6e


def _choose_batch_tile(batch, seq_len, attend_dim, input_dim, dk, dv, out_pad,
                       itemsize, budget_bytes, two_tc):
    """Largest sublane-dense batch tile whose full VMEM footprint fits the budget."""
    # Peak bytes per batch row: double-buffered input/output tiles (input dtype)
    # plus the f32 intermediates (keys, prod, vals, scores/e, e*vals) and small rows.
    per_row = (2 * seq_len * attend_dim * itemsize       # attend_over tile (x2 buffers)
               + 2 * input_dim * itemsize                # query tile (x2 buffers)
               + 2 * out_pad * itemsize                  # output tile (x2 buffers)
               + seq_len * (2 * dk + 3 * dv) * 4         # f32 temporaries
               + (dk + 3 * dv + out_pad) * 4)            # q / denom / ctx / out rows
    cap = max(1, budget_bytes // max(per_row, 1))
    tb = min(batch, 512, cap)
    if two_tc and batch >= 16:
        # Keep >= 2 grid steps so ("parallel",) can shard across v7x's 2 TCs.
        tb = min(tb, (batch + 1) // 2)
    if tb >= batch:
        return batch                                     # single full-size block
    tb = (tb // 8) * 8                                   # round DOWN (never above cap)
    if tb < 8:
        # TODO(synk): long-S fallback should tile S with online-softmax scratch
        # accumulators instead of accepting an over-budget 8-row tile.
        tb = 8
    return tb


def single_token_mh_attention(inputs, attend_over, params, *, num_heads,
                              key_dim, value_dim, temperature, batch_tile=None):
    """inputs: (B, input_dim); attend_over: (B, S, attend_dim) -> (B, output_dim).

    Compute dtype follows attend_over.dtype (no wrapper-side cast/pad HBM pass
    over the large tensor); feed bf16 upstream for the bf16 fast path.
    """
    batch, input_dim = inputs.shape
    b2, seq_len, attend_dim = attend_over.shape
    assert b2 == batch
    cdtype = attend_over.dtype
    if inputs.dtype != cdtype:
        inputs = inputs.astype(cdtype)                   # tiny (B, input_dim) only
    out_dtype = cdtype

    dk = num_heads * key_dim
    dv = num_heads * value_dim

    # Split the fused KV projection so both projection outputs are lane-aligned.
    wkv = params["wkv"].astype(cdtype)
    bkv = params["bkv"].astype(cdtype).reshape(1, dk + dv)
    wk, wv = wkv[:, :dk], wkv[:, dk:]
    bk, bv = bkv[:, :dk], bkv[:, dk:]
    wq = params["wq"].astype(cdtype)
    bq = params["bq"].astype(cdtype).reshape(1, dk)
    wo = params["wo"].astype(cdtype)
    bo = params["bo"].astype(cdtype).reshape(1, -1)
    output_dim = wo.shape[1]

    # Lane-dense output: pad the (tiny) output projection to a multiple of 128
    # lanes so the per-step store is an unmasked vst; slice the result afterwards.
    out_pad = ((output_dim + 127) // 128) * 128
    if out_pad != output_dim:
        wo = jnp.pad(wo, ((0, 0), (0, out_pad - output_dim)))
        bo = jnp.pad(bo, ((0, 0), (0, out_pad - output_dim)))

    # Block-diagonal head map (Dk, Dv): hmap[h*key_dim + d, h*value_dim + j] = 1.
    # Tiny constant-index input, DMA'd once (not rebuilt every grid step).
    hmap = (jnp.arange(dk)[:, None] // key_dim
            == jnp.arange(dv)[None, :] // value_dim).astype(cdtype)

    budget, vmem_limit, two_tc = _vmem_budget()
    itemsize = jnp.dtype(cdtype).itemsize
    tb = batch_tile or _choose_batch_tile(batch, seq_len, attend_dim, input_dim,
                                          dk, dv, out_pad, itemsize, budget, two_tc)
    tb = min(tb, batch)

    kernel = functools.partial(
        _mha_single_token_kernel,
        inv_temperature=1.0 / float(temperature),
        approx_recip=(cdtype == jnp.dtype(jnp.bfloat16)))

    const = lambda b: (0, 0)
    # Ragged last block (batch % tb != 0) is masked by Pallas: no HBM pad pass.
    out = pl.pallas_call(
        kernel,
        out_shape=jax.ShapeDtypeStruct((batch, out_pad), out_dtype),
        grid_spec=pltpu.PrefetchScalarGridSpec(
            num_scalar_prefetch=0,
            grid=(pl.cdiv(batch, tb),),
            in_specs=[
                pl.BlockSpec((tb, input_dim), lambda b: (b, 0)),              # queries
                pl.BlockSpec((tb, seq_len, attend_dim), lambda b: (b, 0, 0)), # attend
                pl.BlockSpec(wk.shape, const),                                # Wk
                pl.BlockSpec(bk.shape, const),                                # bk
                pl.BlockSpec(wv.shape, const),                                # Wv
                pl.BlockSpec(bv.shape, const),                                # bv
                pl.BlockSpec(wq.shape, const),                                # Wq
                pl.BlockSpec(bq.shape, const),                                # bq
                pl.BlockSpec(wo.shape, const),                                # Wo (lane-padded)
                pl.BlockSpec(bo.shape, const),                                # bo (lane-padded)
                pl.BlockSpec(hmap.shape, const),                              # head map
            ],
            out_specs=pl.BlockSpec((tb, out_pad), lambda b: (b, 0)),
        ),
        compiler_params=pltpu.CompilerParams(
            dimension_semantics=("parallel",),
            vmem_limit_bytes=vmem_limit),
    )(inputs, attend_over, wk, bk, wv, bv, wq, bq, wo, bo, hmap)

    return out[:, :output_dim] if out_pad != output_dim else out


def _reference(inputs, attend_over, params, *, num_heads, key_dim, value_dim,
               temperature):
    """Pure-JAX reference mirroring the PyTorch module (mask=None, eval mode)."""
    B, _ = inputs.shape
    _, S, _ = attend_over.shape
    kv = attend_over @ params["wkv"] + params["bkv"]                  # (B, S, Dk+Dv)
    k_total = num_heads * key_dim
    keys = kv[..., :k_total].reshape(B, S, num_heads, key_dim)
    values = kv[..., k_total:].reshape(B, S, num_heads, value_dim)
    q = (inputs @ params["wq"] + params["bq"]).reshape(B, 1, num_heads, key_dim)
    q = jnp.transpose(q, (0, 2, 1, 3))                                # (B,H,1,dk)
    keys = jnp.transpose(keys, (0, 2, 3, 1))                          # (B,H,dk,S)
    values = jnp.transpose(values, (0, 2, 1, 3))                      # (B,H,S,dv)
    sim = jnp.matmul(q, keys) / temperature                           # (B,H,1,S)
    attn = jax.nn.softmax(sim, axis=-1)
    ctx = jnp.matmul(attn, values)                                    # (B,H,1,dv)
    ctx = jnp.transpose(ctx, (0, 2, 1, 3)).reshape(B, 1, -1)
    out = ctx @ params["wo"] + params["bo"]
    return out[:, 0, :]


if __name__ == "__main__":
    # Small shapes consistent with the module.
    B = 2                      # batch
    S = 8                      # max_attend_length (multiple of 8 -> layout-preserving reshapes)
    input_dim = 32
    attend_dim = 32
    num_heads = 4
    total_attention_dim = 32   # -> key_dim = 8
    total_value_dim = 32       # -> value_dim = 8
    output_dim = 32
    key_dim = total_attention_dim // num_heads
    value_dim = total_value_dim // num_heads
    temperature = float(key_dim) ** 0.5

    key = jax.random.PRNGKey(0)
    k = iter(jax.random.split(key, 12))

    # Deterministic parameter init (weights stored as (in_dim, out_dim)).
    params = {
        "wkv": jax.random.normal(next(k), (attend_dim, total_attention_dim + total_value_dim),
                                 jnp.float32) * 0.1,
        "bkv": jax.random.normal(next(k), (1, total_attention_dim + total_value_dim),
                                 jnp.float32) * 0.1,
        "wq": jax.random.normal(next(k), (input_dim, total_attention_dim),
                                jnp.float32) * 0.1,
        "bq": jax.random.normal(next(k), (1, total_attention_dim), jnp.float32) * 0.1,
        "wo": jax.random.normal(next(k), (total_value_dim, output_dim),
                                jnp.float32) * 0.1,
        "bo": jax.random.normal(next(k), (1, output_dim), jnp.float32) * 0.1,
    }

    inputs = jax.random.normal(next(k), (B, input_dim), jnp.float32)
    attend_over = jax.random.normal(next(k), (B, S, attend_dim), jnp.float32)

    common = dict(num_heads=num_heads, key_dim=key_dim, value_dim=value_dim,
                  temperature=temperature)
    ref = _reference(inputs, attend_over, params, **common)

    # 1) f32 path (compute dtype follows the inputs' dtype): near-exact check.
    ctx_f32 = jax.block_until_ready(
        single_token_mh_attention(inputs, attend_over, params, **common))
    assert ctx_f32.shape == (B, output_dim)
    assert jnp.allclose(ctx_f32, ref, atol=2e-4, rtol=2e-4)

    # 2) bf16 fast path: the caller feeds bf16 (no wrapper-side HBM cast pass).
    ctx_bf16 = jax.block_until_ready(
        single_token_mh_attention(inputs.astype(jnp.bfloat16),
                                  attend_over.astype(jnp.bfloat16),
                                  params, **common))
    assert ctx_bf16.shape == (B, output_dim)
    assert jnp.allclose(ctx_bf16.astype(jnp.float32), ref, atol=5e-2, rtol=5e-2)

    # 3) multi-tile + ragged-batch path (B not a multiple of the batch tile;
    #    exercised via an explicit batch_tile so the grid has 3 steps).
    B2 = 20
    inputs2 = jax.random.normal(next(k), (B2, input_dim), jnp.float32)
    attend2 = jax.random.normal(next(k), (B2, S, attend_dim), jnp.float32)
    ref2 = _reference(inputs2, attend2, params, **common)
    ctx2 = jax.block_until_ready(
        single_token_mh_attention(inputs2, attend2, params, batch_tile=8, **common))
    assert ctx2.shape == (B2, output_dim)
    assert jnp.allclose(ctx2, ref2, atol=2e-4, rtol=2e-4)

    print("KERNEL_OK")
</pallas_src>

<mosaic_0001>
module attributes {stable_mosaic.version = 11 : i64} {
  func.func @_mha_single_token_kernel(%arg0: i32, %arg1: memref<2x32xf32, #tpu.memory_space<vmem>>, %arg2: memref<2x8x32xf32, #tpu.memory_space<vmem>>, %arg3: memref<32x32xf32, #tpu.memory_space<vmem>>, %arg4: memref<1x32xf32, #tpu.memory_space<vmem>>, %arg5: memref<32x32xf32, #tpu.memory_space<vmem>>, %arg6: memref<1x32xf32, #tpu.memory_space<vmem>>, %arg7: memref<32x32xf32, #tpu.memory_space<vmem>>, %arg8: memref<1x32xf32, #tpu.memory_space<vmem>>, %arg9: memref<32x128xf32, #tpu.memory_space<vmem>>, %arg10: memref<1x128xf32, #tpu.memory_space<vmem>>, %arg11: memref<32x32xf32, #tpu.memory_space<vmem>>, %arg12: memref<2x128xf32, #tpu.memory_space<vmem>>) attributes {dimension_semantics = [#tpu.dimension_semantics<parallel>], iteration_bounds = array<i64: 1>, scalar_prefetch = 0 : i64, scratch_operands = 0 : i64, tpu.core_type = #tpu.core_type<tc>, window_params = [{transform_indices = @transform_0, window_bounds = array<i64: 2, 32>}, {transform_indices = @transform_1, window_bounds = array<i64: 2, 8, 32>}, {pipeline_mode = #tpu.pipeline_mode<synchronous>, transform_indices = @transform_2, window_bounds = array<i64: 32, 32>}, {pipeline_mode = #tpu.pipeline_mode<synchronous>, transform_indices = @transform_3, window_bounds = array<i64: 1, 32>}, {pipeline_mode = #tpu.pipeline_mode<synchronous>, transform_indices = @transform_4, window_bounds = array<i64: 32, 32>}, {pipeline_mode = #tpu.pipeline_mode<synchronous>, transform_indices = @transform_5, window_bounds = array<i64: 1, 32>}, {pipeline_mode = #tpu.pipeline_mode<synchronous>, transform_indices = @transform_6, window_bounds = array<i64: 32, 32>}, {pipeline_mode = #tpu.pipeline_mode<synchronous>, transform_indices = @transform_7, window_bounds = array<i64: 1, 32>}, {pipeline_mode = #tpu.pipeline_mode<synchronous>, transform_indices = @transform_8, window_bounds = array<i64: 32, 128>}, {pipeline_mode = #tpu.pipeline_mode<synchronous>, transform_indices = @transform_9, window_bounds = array<i64: 1, 128>}, {pipeline_mode = #tpu.pipeline_mode<synchronous>, transform_indices = @transform_10, window_bounds = array<i64: 32, 32>}, {transform_indices = @transform_11, window_bounds = array<i64: 2, 128>}]} {
    %c0 = arith.constant 0 : index
    %c0_0 = arith.constant 0 : index
    %c0_1 = arith.constant 0 : index
    %0 = vector.load %arg2[%c0, %c0_0, %c0_1] : memref<2x8x32xf32, #tpu.memory_space<vmem>>, vector<2x8x32xf32>
    %1 = vector.shape_cast %0 : vector<2x8x32xf32> to vector<16x32xf32>
    %c0_2 = arith.constant 0 : index
    %c0_3 = arith.constant 0 : index
    %2 = vector.load %arg3[%c0_2, %c0_3] : memref<32x32xf32, #tpu.memory_space<vmem>>, vector<32x32xf32>
    %cst = arith.constant dense<0.000000e+00> : vector<16x32xf32>
    %3 = tpu.matmul %1, %2, %cst {dimension_numbers = #tpu.dot_dimension_numbers<[1], [0], [0], [1], [0, 0, 1, 1], [], []>} : vector<16x32xf32>, vector<32x32xf32>, vector<16x32xf32> -> vector<16x32xf32>
    %c0_4 = arith.constant 0 : index
    %c0_5 = arith.constant 0 : index
    %4 = vector.load %arg4[%c0_4, %c0_5] : memref<1x32xf32, #tpu.memory_space<vmem>>, vector<1x32xf32>
    %5 = vector.broadcast %4 : vector<1x32xf32> to vector<16x32xf32>
    %6 = arith.addf %3, %5 : vector<16x32xf32>
    %c0_6 = arith.constant 0 : index
    %c0_7 = arith.constant 0 : index
    %7 = vector.load %arg5[%c0_6, %c0_7] : memref<32x32xf32, #tpu.memory_space<vmem>>, vector<32x32xf32>
    %cst_8 = arith.constant dense<0.000000e+00> : vector<16x32xf32>
    %8 = tpu.matmul %1, %7, %cst_8 {dimension_numbers = #tpu.dot_dimension_numbers<[1], [0], [0], [1], [0, 0, 1, 1], [], []>} : vector<16x32xf32>, vector<32x32xf32>, vector<16x32xf32> -> vector<16x32xf32>
    %c0_9 = arith.constant 0 : index
    %c0_10 = arith.constant 0 : index
    %9 = vector.load %arg6[%c0_9, %c0_10] : memref<1x32xf32, #tpu.memory_space<vmem>>, vector<1x32xf32>
    %10 = vector.broadcast %9 : vector<1x32xf32> to vector<16x32xf32>
    %11 = arith.addf %8, %10 : vector<16x32xf32>
    %c0_11 = arith.constant 0 : index
    %c0_12 = arith.constant 0 : index
    %12 = vector.load %arg1[%c0_11, %c0_12] : memref<2x32xf32, #tpu.memory_space<vmem>>, vector<2x32xf32>
    %c0_13 = arith.constant 0 : index
    %c0_14 = arith.constant 0 : index
    %13 = vector.load %arg7[%c0_13, %c0_14] : memref<32x32xf32, #tpu.memory_space<vmem>>, vector<32x32xf32>
    %cst_15 = arith.constant dense<0.000000e+00> : vector<2x32xf32>
    %14 = tpu.matmul %12, %13, %cst_15 {dimension_numbers = #tpu.dot_dimension_numbers<[1], [0], [0], [1], [0, 0, 1, 1], [], []>} : vector<2x32xf32>, vector<32x32xf32>, vector<2x32xf32> -> vector<2x32xf32>
    %c0_16 = arith.constant 0 : index
    %c0_17 = arith.constant 0 : index
    %15 = vector.load %arg8[%c0_16, %c0_17] : memref<1x32xf32, #tpu.memory_space<vmem>>, vector<1x32xf32>
    %16 = vector.broadcast %15 : vector<1x32xf32> to vector<2x32xf32>
    %17 = arith.addf %14, %16 : vector<2x32xf32>
    %cst_18 = arith.constant 0.353553385 : f32
    %18 = vector.broadcast %cst_18 : f32 to vector<2x32xf32>
    %19 = arith.mulf %17, %18 : vector<2x32xf32>
    %20 = vector.shape_cast %6 : vector<16x32xf32> to vector<2x8x32xf32>
    %21 = vector.shape_cast %19 : vector<2x32xf32> to vector<2x1x32xf32>
    %22 = vector.broadcast %21 : vector<2x1x32xf32> to vector<2x8x32xf32>
    %23 = arith.mulf %20, %22 : vector<2x8x32xf32>
    %24 = vector.shape_cast %23 : vector<2x8x32xf32> to vector<16x32xf32>
    %c0_19 = arith.constant 0 : index
    %c0_20 = arith.constant 0 : index
    %25 = vector.load %arg11[%c0_19, %c0_20] : memref<32x32xf32, #tpu.memory_space<vmem>>, vector<32x32xf32>
    %cst_21 = arith.constant dense<0.000000e+00> : vector<16x32xf32>
    %26 = tpu.matmul %24, %25, %cst_21 {dimension_numbers = #tpu.dot_dimension_numbers<[1], [0], [0], [1], [0, 0, 1, 1], [], []>} : vector<16x32xf32>, vector<32x32xf32>, vector<16x32xf32> -> vector<16x32xf32>
    %27 = vector.shape_cast %26 : vector<16x32xf32> to vector<2x8x32xf32>
    %cst_22 = arith.constant dense<0xFF800000> : vector<2x32xf32>
    %28 = vector.multi_reduction <maximumf>, %27, %cst_22 [1] : vector<2x8x32xf32> to vector<2x32xf32>
    %29 = vector.shape_cast %28 : vector<2x32xf32> to vector<2x1x32xf32>
    %30 = vector.broadcast %29 : vector<2x1x32xf32> to vector<2x8x32xf32>
    %31 = arith.subf %27, %30 : vector<2x8x32xf32>
    %32 = math.exp %31 : vector<2x8x32xf32>
    %cst_23 = arith.constant dense<0.000000e+00> : vector<2x32xf32>
    %33 = vector.multi_reduction <add>, %32, %cst_23 [1] : vector<2x8x32xf32> to vector<2x32xf32>
    %34 = vector.shape_cast %11 : vector<16x32xf32> to vector<2x8x32xf32>
    %35 = arith.mulf %32, %34 : vector<2x8x32xf32>
    %cst_24 = arith.constant dense<0.000000e+00> : vector<2x32xf32>
    %36 = vector.multi_reduction <add>, %35, %cst_24 [1] : vector<2x8x32xf32> to vector<2x32xf32>
    %37 = tpu.reciprocal %33 : vector<2x32xf32> -> vector<2x32xf32>
    %38 = arith.mulf %36, %37 : vector<2x32xf32>
    %c0_25 = arith.constant 0 : index
    %c0_26 = arith.constant 0 : index
    %39 = vector.load %arg9[%c0_25, %c0_26] : memref<32x128xf32, #tpu.memory_space<vmem>>, vector<32x128xf32>
    %cst_27 = arith.constant dense<0.000000e+00> : vector<2x128xf32>
    %40 = tpu.matmul %38, %39, %cst_27 {dimension_numbers = #tpu.dot_dimension_numbers<[1], [0], [0], [1], [0, 0, 1, 1], [], []>} : vector<2x32xf32>, vector<32x128xf32>, vector<2x128xf32> -> vector<2x128xf32>
    %c0_28 = arith.constant 0 : index
    %c0_29 = arith.constant 0 : index
    %41 = vector.load %arg10[%c0_28, %c0_29] : memref<1x128xf32, #tpu.memory_space<vmem>>, vector<1x128xf32>
    %42 = vector.broadcast %41 : vector<1x128xf32> to vector<2x128xf32>
    %43 = arith.addf %40, %42 : vector<2x128xf32>
    %c0_30 = arith.constant 0 : index
    %c0_31 = arith.constant 0 : index
    %44 = vector.load %arg12[%c0_30, %c0_31] : memref<2x128xf32, #tpu.memory_space<vmem>>, vector<2x128xf32>
    tpu.vector_store %arg12[%c0_30, %c0_31], %43 {strides = array<i32>} : memref<2x128xf32, #tpu.memory_space<vmem>>, vector<2x128xf32>,
    return
  }
  func.func @transform_0(%arg0: i32) -> (i32, i32) {
    %c0_i32 = arith.constant 0 : i32
    %c0_i32_0 = arith.constant 0 : i32
    return %arg0, %c0_i32 : i32, i32
  }
  func.func @transform_1(%arg0: i32) -> (i32, i32, i32) {
    %c0_i32 = arith.constant 0 : i32
    %c0_i32_0 = arith.constant 0 : i32
    %c0_i32_1 = arith.constant 0 : i32
    return %arg0, %c0_i32, %c0_i32_0 : i32, i32, i32
  }
  func.func @transform_2(%arg0: i32) -> (i32, i32) {
    %c0_i32 = arith.constant 0 : i32
    %c0_i32_0 = arith.constant 0 : i32
    %c0_i32_1 = arith.constant 0 : i32
    return %c0_i32, %c0_i32_0 : i32, i32
  }
  func.func @transform_3(%arg0: i32) -> (i32, i32) {
    %c0_i32 = arith.constant 0 : i32
    %c0_i32_0 = arith.constant 0 : i32
    %c0_i32_1 = arith.constant 0 : i32
    return %c0_i32, %c0_i32_0 : i32, i32
  }
  func.func @transform_4(%arg0: i32) -> (i32, i32) {
    %c0_i32 = arith.constant 0 : i32
    %c0_i32_0 = arith.constant 0 : i32
    %c0_i32_1 = arith.constant 0 : i32
    return %c0_i32, %c0_i32_0 : i32, i32
  }
  func.func @transform_5(%arg0: i32) -> (i32, i32) {
    %c0_i32 = arith.constant 0 : i32
    %c0_i32_0 = arith.constant 0 : i32
    %c0_i32_1 = arith.constant 0 : i32
    return %c0_i32, %c0_i32_0 : i32, i32
  }
  func.func @transform_6(%arg0: i32) -> (i32, i32) {
    %c0_i32 = arith.constant 0 : i32
    %c0_i32_0 = arith.constant 0 : i32
    %c0_i32_1 = arith.constant 0 : i32
    return %c0_i32, %c0_i32_0 : i32, i32
  }
  func.func @transform_7(%arg0: i32) -> (i32, i32) {
    %c0_i32 = arith.constant 0 : i32
    %c0_i32_0 = arith.constant 0 : i32
    %c0_i32_1 = arith.constant 0 : i32
    return %c0_i32, %c0_i32_0 : i32, i32
  }
  func.func @transform_8(%arg0: i32) -> (i32, i32) {
    %c0_i32 = arith.constant 0 : i32
    %c0_i32_0 = arith.constant 0 : i32
    %c0_i32_1 = arith.constant 0 : i32
    return %c0_i32, %c0_i32_0 : i32, i32
  }
  func.func @transform_9(%arg0: i32) -> (i32, i32) {
    %c0_i32 = arith.constant 0 : i32
    %c0_i32_0 = arith.constant 0 : i32
    %c0_i32_1 = arith.constant 0 : i32
    return %c0_i32, %c0_i32_0 : i32, i32
  }
  func.func @transform_10(%arg0: i32) -> (i32, i32) {
    %c0_i32 = arith.constant 0 : i32
    %c0_i32_0 = arith.constant 0 : i32
    %c0_i32_1 = arith.constant 0 : i32
    return %c0_i32, %c0_i32_0 : i32, i32
  }
  func.func @transform_11(%arg0: i32) -> (i32, i32) {
    %c0_i32 = arith.constant 0 : i32
    %c0_i32_0 = arith.constant 0 : i32
    return %arg0, %c0_i32 : i32, i32
  }
}

</mosaic_0001>

<bundles_post_ra>
// kernel: tpu_custom_call.1
= control target key start
LH: loop header
LB: loop body
LE: loop exit
PB: predicated region body
PF: predicated region fallthrough
CT: control target
= control target key end

     0   :  { %16 = vsyncpa [#allocation3], 0  ;;  %s1196_s0 = inlined_call_operand.hbm [shape: f32[2,32], index: 0, kind: input, shape index: {}]   ;;  %s1197_s1 = inlined_call_operand.hbm [shape: f32[2,8,32], index: 1, kind: input, shape index: {}]   ;;  %s1198_s2 = inlined_call_operand.hbm [shape: f32[32,32], index: 2, kind: input, shape index: {}]   ;;  %s1199_s3 = inlined_call_operand.vmem [shape: f32[1,32], index: 3, kind: input, shape index: {}]   ;;  %s1200_s4 = inlined_call_operand.hbm [shape: f32[32,32], index: 4, kind: input, shape index: {}]   ;;  %s1201_s5 = inlined_call_operand.vmem [shape: f32[1,32], index: 5, kind: input, shape index: {}]   ;;  %s1202_s6 = inlined_call_operand.hbm [shape: f32[32,32], index: 6, kind: input, shape index: {}]   ;;  %s1203_s7 = inlined_call_operand.vmem [shape: f32[1,32], index: 7, kind: input, shape index: {}]   ;;  %s1204_s8 = inlined_call_operand.hbm [shape: f32[32,128], index: 8, kind: input, shape index: {}]   ;;  %s1205_s9 = inlined_call_operand.vmem [shape: f32[1,128], index: 9, kind: input, shape index: {}]   ;;  %s1206_s10 = inlined_call_operand.vmem [shape: f32[32,32], index: 10, kind: input, shape index: {}]   ;;  %s1207_s11 = inlined_call_operand.hbm [shape: f32[2,128], index: 11, kind: output, shape index: {}]  }
   0x1   :  { %17 = vsyncpa [#allocation6], 0 }
   0x2   :  { %18 = vsyncpa [#allocation9], 0 }
   0x3   :  { %19 = vsyncpa [#allocation12], 0 }
   0x4   :  { %20 = vsyncpa [#allocation4], 0  ;;  %s982_s17 = smov [#allocation5]   ;;  %s818_s21 = scalar_lea.hbm %s1197_s1, 256 }
   0x5   :  { %s36_s18 = sshll.u32 %s982_s17, 4  ;;  %p819_p0 = scmp.ne.s32.totalorder %s1197_s1, %s818_s21  ;;  %s37_s18 = int_to_ptr.vmem [resolvable:$true] %s36_s18 }
   0x6   :  { %p822_p1 = scmp.lt.u32.totalorder %s818_s21, %s1197_s1 }
   0x8   :  { %p824_p2 = pnand %p822_p1, %p819_p0 }
   0xa   :  { %827 = shalt.err (!%p824_p2)
}
   0xb   :  { %s828_s26 = scalar_lea.vmem %s37_s18, 256  ;;  %p833_p4 = scmp.lt.s32.totalorder %s37_s18, %s37_s18 }
   0xc   :  { %p829_p3 = scmp.ne.s32.totalorder %s37_s18, %s828_s26  ;;  %p834_p5 = scmp.lt.s32.totalorder %s828_s26, %s828_s26 }
   0xe   :  { %p835_p6 = por %p834_p5, %p833_p4 }
  0x10   :  { %p836_p7 = pnand %p835_p6, %p829_p3 }
  0x12   :  { %839 = shalt.err (!%p836_p7)
}
  0x13   :  { %s983_s27 = smov 128   ;;  %s984_s28 = smov 8  }
  0x14   :  { %42 = dma.hbm_to_vmem [thread:$0]  %s1197_s1, 256, %s37_s18, [#allocation6], %s983_s27, %s983_s27, %s984_s28  }
  0x15   :  { %s985_s12 = smov [#allocation8]   ;;  %s986_s14 = smov [#allocation2]  }
  0x16   :  { %s62_s13 = sshll.u32 %s985_s12, 4  ;;  %s27_s15 = sshll.u32 %s986_s14, 4  ;;  %s63_s13 = int_to_ptr.vmem [resolvable:$true] %s62_s13  ;;  %s28_s15 = int_to_ptr.vmem [resolvable:$true] %s27_s15 }
  0x17   :  { %s840_s19 = scalar_lea.hbm %s1200_s4, 512 }
  0x18   :  { %p841_p8 = scmp.ne.s32.totalorder %s1200_s4, %s840_s19  ;;  %p844_p9 = scmp.lt.u32.totalorder %s840_s19, %s1200_s4 }
  0x1a   :  { %p846_p10 = pnand %p844_p9, %p841_p8 }
  0x1c   :  { %849 = shalt.err (!%p846_p10)
}
  0x1d   :  { %s850_s1 = scalar_lea.vmem %s63_s13, 512  ;;  %p855_p12 = scmp.lt.s32.totalorder %s63_s13, %s63_s13 }
  0x1e   :  { %p851_p11 = scmp.ne.s32.totalorder %s63_s13, %s850_s1  ;;  %p856_p13 = scmp.lt.s32.totalorder %s850_s1, %s850_s1 }
  0x20   :  { %p857_p0 = por %p856_p13, %p855_p12 }
  0x22   :  { %p858_p1 = pnand %p857_p0, %p851_p11 }
  0x24   :  { %861 = shalt.err (!%p858_p1)
}
  0x25   :  { %68 = dma.hbm_to_vmem [thread:$0]  %s1200_s4, 512, %s63_s13, [#allocation9], %s983_s27, %s983_s27, %s984_s28  }
  0x26   :  { %s862_s29 = scalar_lea.hbm %s1196_s0, 32 }
  0x27   :  { %p863_p2 = scmp.ne.s32.totalorder %s1196_s0, %s862_s29  ;;  %p866_p3 = scmp.lt.u32.totalorder %s862_s29, %s1196_s0 }
  0x29   :  { %p868_p4 = pnand %p866_p3, %p863_p2 }
  0x2b   :  { %871 = shalt.err (!%p868_p4)
}
  0x2c   :  { %s872_s17 = scalar_lea.vmem %s28_s15, 32  ;;  %p877_p6 = scmp.lt.s32.totalorder %s28_s15, %s28_s15 }
  0x2d   :  { %p873_p5 = scmp.ne.s32.totalorder %s28_s15, %s872_s17  ;;  %p878_p7 = scmp.lt.s32.totalorder %s872_s17, %s872_s17 }
  0x2f   :  { %p879_p8 = por %p878_p7, %p877_p6 }
  0x31   :  { %p880_p9 = pnand %p879_p8, %p873_p5 }
  0x33   :  { %883 = shalt.err (!%p880_p9)
}
  0x34   :  { %30 = dma.hbm_to_vmem [thread:$0]  %s1196_s0, 32, %s28_s15, [#allocation3]  }
  0x35   :  { %s987_s19 = smov [#allocation7]   ;;  %s988_s21 = smov [#allocation10]  }
  0x36   :  { %s48_s20 = sshll.u32 %s987_s19, 4  ;;  %s76_s22 = sshll.u32 %s988_s21, 4  ;;  %s49_s20 = int_to_ptr.vmem [resolvable:$true] %s48_s20  ;;  %s77_s22 = int_to_ptr.vmem [resolvable:$true] %s76_s22 }
  0x37   :  { %s884_s18 = scalar_lea.hbm %s1198_s2, 512 }
  0x38   :  { %p885_p10 = scmp.ne.s32.totalorder %s1198_s2, %s884_s18  ;;  %p888_p11 = scmp.lt.u32.totalorder %s884_s18, %s1198_s2 }
  0x3a   :  { %p890_p12 = pnand %p888_p11, %p885_p10 }
  0x3c   :  { %893 = shalt.err (!%p890_p12)
}
  0x3d   :  { %s894_s0 = scalar_lea.vmem %s49_s20, 512  ;;  %p899_p0 = scmp.lt.s32.totalorder %s49_s20, %s49_s20 }
  0x3e   :  { %p895_p13 = scmp.ne.s32.totalorder %s49_s20, %s894_s0  ;;  %p900_p1 = scmp.lt.s32.totalorder %s894_s0, %s894_s0 }
  0x40   :  { %p901_p2 = por %p900_p1, %p899_p0 }
  0x42   :  { %p902_p3 = pnand %p901_p2, %p895_p13 }
  0x44   :  { %905 = shalt.err (!%p902_p3)
}
  0x45   :  { %54 = dma.hbm_to_vmem [thread:$0]  %s1198_s2, 512, %s49_s20, [#allocation6], %s983_s27, %s983_s27, %s984_s28  }
  0x46   :  { %s906_s16 = scalar_lea.hbm %s1202_s6, 512 }
  0x47   :  { %p907_p4 = scmp.ne.s32.totalorder %s1202_s6, %s906_s16  ;;  %p910_p5 = scmp.lt.u32.totalorder %s906_s16, %s1202_s6 }
  0x49   :  { %p912_p6 = pnand %p910_p5, %p907_p4 }
  0x4b   :  { %915 = shalt.err (!%p912_p6)
}
  0x4c   :  { %s916_s21 = scalar_lea.vmem %s77_s22, 512  ;;  %p921_p8 = scmp.lt.s32.totalorder %s77_s22, %s77_s22 }
  0x4d   :  { %p917_p7 = scmp.ne.s32.totalorder %s77_s22, %s916_s21  ;;  %p922_p9 = scmp.lt.s32.totalorder %s916_s21, %s916_s21 }
  0x4f   :  { %p923_p10 = por %p922_p9, %p921_p8 }
  0x51   :  { %p924_p11 = pnand %p923_p10, %p917_p7 }
  0x53   :  { %927 = shalt.err (!%p924_p11)
}
  0x54   :  { %82 = dma.hbm_to_vmem [thread:$0]  %s1202_s6, 512, %s77_s22, [#allocation9], %s983_s27, %s983_s27, %s984_s28  }
  0x55   :  { %s989_s23 = smov [#allocation11]   ;;  %s928_s25 = scalar_lea.hbm %s1204_s8, 512 }
  0x56   :  { %s90_s1 = sshll.u32 %s989_s23, 4  ;;  %p929_p12 = scmp.ne.s32.totalorder %s1204_s8, %s928_s25  ;;  %s91_s1 = int_to_ptr.vmem [resolvable:$true] %s90_s1 }
  0x57   :  { %p932_p13 = scmp.lt.u32.totalorder %s928_s25, %s1204_s8 }
  0x59   :  { %p934_p0 = pnand %p932_p13, %p929_p12 }
  0x5b   :  { %937 = shalt.err (!%p934_p0)
}
  0x5c   :  { %s938_s30 = scalar_lea.vmem %s91_s1, 512  ;;  %p943_p2 = scmp.lt.s32.totalorder %s91_s1, %s91_s1 }
  0x5d   :  { %p939_p1 = scmp.ne.s32.totalorder %s91_s1, %s938_s30  ;;  %p944_p3 = scmp.lt.s32.totalorder %s938_s30, %s938_s30 }
  0x5f   :  { %p945_p4 = por %p944_p3, %p943_p2 }
  0x61   :  { %p946_p5 = pnand %p945_p4, %p939_p1 }
  0x63   :  { %949 = shalt.err (!%p946_p5)
}
  0x64   :  { %96 = dma.hbm_to_vmem [thread:$0]  %s1204_s8, 512, %s91_s1, [#allocation12], %s983_s27, %s983_s27, %s984_s28  }
  0x65   :  { %972 = dma.done.wait [#allocation3], 32  }
  0x66   :  { %973 = vsyncadd [#allocation3], 4294967264 }
  0x67   :  { %974 = dma.done.wait [#allocation6], 768  }
  0x68   :  { %975 = vsyncadd [#allocation6], 4294966528 }
  0x69   :  { %976 = dma.done.wait [#allocation9], 1024  }
  0x6a   :  { %977 = vsyncadd [#allocation9], 4294966272 }
  0x6b   :  { %978 = dma.done.wait [#allocation12], 512  }
  0x6c   :  { %979 = vsyncadd [#allocation12], 4294966784  ;;  %vm132_vm0 = vcmask 261120   ;;  %v121_v0 = vld [vmem:[#allocation7] sm:$0xff]  ;;  %v122_v1 = vld [vmem:[#allocation7 + $0x8] sm:$0xff]  ;;  %v990_v11 = vmov 0.0|0.0   ;;  %v390_v33 = vlaneseq }
  0x6d   :  { %v123_v2 = vld [vmem:[#allocation7 + $0x10] sm:$0xff]  ;;  %v761_v3 = vpack.c.bf16 %v122_v1, %v121_v0  ;;  %v124_v4 = vld [vmem:[#allocation7 + $0x18] sm:$0xff]  ;;  %v301_v7 = vld [vmem:[#allocation10] sm:$0xff]  ;;  %vm991_vm1 = vmmov 0   ;;  %v992_v15 = vmov 0.0   ;;  %vm573_vm2 = vcmask 1041409  }
  0x6e   :  { %v119_v5 = vld [vmem:[#allocation5] sm:$0xff]  ;;  %v765_v6 = vpack.c.bf16 %v124_v4, %v123_v2  ;;  %v302_v8 = vld [vmem:[#allocation10 + $0x8] sm:$0xff]  ;;  %v120_v9 = vld [vmem:[#allocation5 + $0x8] sm:$0xff]  ;;  %v993_v31 = vmov 1966171168   ;;  %v391_v35 = vshrl.u32 %v390_v33, 7 }
  0x6f   :  { %714 = vmatprep.mubr.msk.f32.mxu0 %vm132_vm0, %v119_v5  ;;  %725 = vmatprep.mubr.msk.f32.mxu1 %vm132_vm0, %v119_v5  ;;  %v778_v10 = vpack.c.bf16 %v302_v8, %v301_v7  ;;  %v303_v12 = vld [vmem:[#allocation10 + $0x10] sm:$0xff]  ;;  %v304_v13 = vld [vmem:[#allocation10 + $0x18] sm:$0xff]  ;;  %v300_v16 = vld [vmem:[#allocation2] sm:$0x3]  ;;  %v388_v32 = vunpack.c.l.s4 %v993_v31  ;;  %s994_s20 = smov [#allocation13]  }
  0x70   :  { %762 = vmatprep.subr.bf16.mxu0 %v761_v3  ;;  %v781_v14 = vpack.c.bf16 %v304_v13, %v303_v12  ;;  %v214_v17 = vld [vmem:[#allocation8] sm:$0xff]  ;;  %v215_v18 = vld [vmem:[#allocation8 + $0x8] sm:$0xff]  ;;  %v216_v20 = vld [vmem:[#allocation8 + $0x10] sm:$0xff]  ;;  %v411_v43 = vsub.s32 0, %v391_v35  ;;  %s654_s23 = sshll.u32 %s994_s20, 4  ;;  %s655_s23 = int_to_ptr.vmem [resolvable:$true] %s654_s23 }
  0x71   :  { %764 = vmatpush3.bf16.msra.mxu0 %v761_v3  ;;  %v769_v19 = vpack.c.bf16 %v215_v18, %v214_v17  ;;  %v217_v21 = vld [vmem:[#allocation8 + $0x18] sm:$0xff]  ;;  %v421_v23 = vld [vmem:[%s1206_s10] sm:$0xff]  ;;  %v424_v27 = vld [vmem:[%s1206_s10 + $0x18] sm:$0xff]  ;;  %v389_v34 = vunpack.c.0.s8 %v388_v32  ;;  %s950_s1 = scalar_lea.vmem %s655_s23, 32  ;;  %p955_p7 = scmp.lt.s32.totalorder %s655_s23, %s655_s23 }
  0x72   :  { %766 = vmatprep.subr.bf16.mxu0 %v765_v6  ;;  %v773_v22 = vpack.c.bf16 %v217_v21, %v216_v20  ;;  %v422_v24 = vld [vmem:[%s1206_s10 + $0x8] sm:$0xff]  ;;  %v423_v26 = vld [vmem:[%s1206_s10 + $0x10] sm:$0xff]  ;;  %v672_v36 = vld [vmem:[%s1203_s7] ss:$0 sm:$0xff]  ;;  %p951_p6 = scmp.ne.s32.totalorder %s655_s23, %s950_s1  ;;  %p956_p8 = scmp.lt.s32.totalorder %s950_s1, %s950_s1 }
  0x73   :  { %770 = vmatprep.subr.bf16.mxu1 %v769_v19  ;;  %v783_v25 = vpack.c.bf16 %v422_v24, %v421_v23  ;;  %v787_v28 = vpack.c.bf16 %v424_v27, %v423_v26  ;;  %v392_v39 = vsub.s32 %v389_v34, %v391_v35  ;;  %v666_v44 = vld [vmem:[%s1199_s3] ss:$0 sm:$0xff]  ;;  %v560_v56 = vld [vmem:[#allocation11] sm:$0xff]  ;;  %v562_v58 = vld [vmem:[#allocation11 + $0x10] sm:$0xff] }
  0x74   :  { %772 = vmatpush3.bf16.msra.mxu1 %v769_v19  ;;  %v561_v57 = vld [vmem:[#allocation11 + $0x8] sm:$0xff]  ;;  %v563_v60 = vld [vmem:[#allocation11 + $0x18] sm:$0xff]  ;;  %p957_p9 = por %p956_p8, %p955_p7 }
  0x75   :  { %768 = vmatpush3.bf16.msra.mxu0 %v765_v6  ;;  %774 = vmatprep.subr.bf16.mxu1 %v773_v22  ;;  %v792_v59 = vpack.c.bf16 %v561_v57, %v560_v56  ;;  %v795_v61 = vpack.c.bf16 %v563_v60, %v562_v58  ;;  %v669_v18 = vld [vmem:[%s1201_s5] ss:$0 sm:$0xff] }
  0x76   :  { %777 = vmatprep.subr.bf16.mxu0 %v990_v11  ;;  %v676_v58 = vld [vmem:[%s1205_s9] ss:$0 sm:$0xff]  ;;  %p958_p10 = pnand %p957_p9, %p951_p6 }
  0x78   :  { %715 = vmatmul.mubr.msk.f32.vlgmr.msra.gmra.mrb[0].mxu0 %vm132_vm0, %v120_v9  ;;  %776 = vmatpush3.bf16.msra.mxu1 %v773_v22 }
  0x79   :  { %779 = vmatpush3.bf16.msra.mxu0 %v778_v10  ;;  %736 = vmatprep.mubr.msk.f32.mxu0 %vm991_vm1, %v992_v15 }
  0x7a   :  { %780 = vmatprep.subr.bf16.mxu0 %v990_v11  ;;  %784 = vmatprep.subr.bf16.mxu1 %v783_v25 }
  0x7b   :  { %726 = vmatmul.mubr.msk.f32.vlgmr.msra.gmra.mrb[0].mxu1 %vm132_vm0, %v120_v9 }
  0x7c   :  { %786 = vmatpush3.bf16.msra.mxu1 %v783_v25 }
  0x7d   :  { %782 = vmatpush3.bf16.msra.mxu0 %v781_v14  ;;  %788 = vmatprep.subr.bf16.mxu1 %v787_v28 }
  0x7e   :  { %791 = vmatprep.subr.bf16.mxu0 %v990_v11 }
  0x80   :  { %737 = vmatmul.mubr.msk.f32.vlgmr.msra.gmra.mrb[2].mxu0 %vm132_vm0, %v300_v16  ;;  %790 = vmatpush3.bf16.msra.mxu1 %v787_v28 }
  0x81   :  { %758 = vmatprep.mubr.msk.f32.mxu0 %vm991_vm1, %v992_v15  ;;  %793 = vmatpush3.bf16.msra.mxu0 %v792_v59 }
  0x82   :  { %794 = vmatprep.subr.bf16.mxu0 %v990_v11 }
  0x85   :  { %796 = vmatpush3.bf16.msra.mxu0 %v795_v61 }
 0x14b   :  { %v716_v29 = vpop.f32.mrb[0].mxu0 }
 0x14c   :  { %v205_v30 = vpop.f32.mrb[1].mxu0  ;;  %v211_v50 = vadd.f32 %v716_v29, %v666_v44 }
 0x14d   :  { %v206_v47 = vadd.f32 %v666_v44, %v205_v30 }
 0x14e   :  { %v727_v54 = vpop.f32.mrb[0].mxu1 }
 0x14f   :  { %v291_v55 = vpop.f32.mrb[1].mxu1  ;;  %v297_v19 = vadd.f32 %v727_v54, %v669_v18 }
 0x150   :  { %v292_v21 = vadd.f32 %v669_v18, %v291_v55 }
 0x153   :  { %v381_v37 = vpop.f32.mrb[2].mxu0 }
 0x154   :  { %v382_v38 = vadd.f32 %v672_v36, %v381_v37  ;;  %v738_v40 = vpop.f32.mrb[3].mxu0 }
 0x156   :  { %v385_v41 = vmul.f32 0.35355338, %v382_v38 }
 0x158   :  { %v393_v42 = vrot.slane %v385_v41, %v392_v39 }
 0x15a   :  { %v394_v45 = vcombine.high %v393_v42, %v393_v42  ;;  %v401_v46 = vrot.slane %v393_v42, %v392_v39 }
 0x15c   :  { %v408_v48 = vrot.slane %v394_v45, %v392_v39  ;;  %v412_v49 = vrot.slane %v401_v46, %v411_v43 }
 0x15e   :  { %v416_v51 = vrot.slane %v408_v48, %v411_v43  ;;  %v419_v52 = vmul.f32 %v412_v49, %v206_v47 }
 0x160   :  { %v420_v53 = vmul.f32 %v416_v51, %v211_v50  ;;  %747 = vmatprep.mubr.msk.f32.mxu1 %vm132_vm0, %v419_v52 }
 0x162   :  { %748 = vmatmul.mubr.msk.f32.vlgmr.msra.gmra.mrb[2].mxu1 %vm132_vm0, %v420_v53 }
 0x235   :  { %v749_v62 = vpop.f32.mrb[2].mxu1 }
 0x236   :  { %v513_v63 = vsel %vm132_vm0, %v749_v62, -inf  ;;  %v497_v0 = vpop.f32.mrb[3].mxu1 }
 0x237   :  { %v514_v1 = vrot.slane %v513_v63, 4  ;;  %v506_v2 = vsel %vm132_vm0, %v497_v0, -inf }
 0x238   :  { %v507_v3 = vrot.slane %v506_v2, 4 }
 0x239   :  { %v515_v4 = vmax.f32 %v513_v63, %v514_v1 }
 0x23a   :  { %v508_v5 = vmax.f32 %v506_v2, %v507_v3 }
 0x23b   :  { %v516_v6 = vrot.slane %v515_v4, 2 }
 0x23c   :  { %v509_v7 = vrot.slane %v508_v5, 2 }
 0x23d   :  { %v517_v8 = vmax.f32 %v515_v4, %v516_v6 }
 0x23e   :  { %v510_v9 = vmax.f32 %v508_v5, %v509_v7 }
 0x23f   :  { %v518_v10 = vrot.slane %v517_v8, 1 }
 0x240   :  { %v511_v12 = vrot.slane %v510_v9, 1 }
 0x241   :  { %v519_v13 = vmax.f32 %v517_v8, %v518_v10 }
 0x242   :  { %v512_v14 = vmax.f32 %v510_v9, %v511_v12 }
 0x243   :  { %v521_v11 = vsub.f32 %v749_v62, %v519_v13 }
 0x244   :  { %v520_v15 = vsub.f32 %v497_v0, %v512_v14 }
 0x245   :  { %v524_v16 = vmul.f32 1.442695, %v521_v11 }
 0x246   :  { %v522_v17 = vmul.f32 1.442695, %v520_v15 }
 0x247   :  { %810 = vpow2.f32 %v524_v16 }
 0x248   :  { %812 = vpow2.f32 %v522_v17 }
 0x251   :  { %v811_v20 = vpop.eup %810 }
 0x252   :  { %v813_v22 = vpop.eup %812  ;;  %v533_v23 = vsel %vm132_vm0, %v811_v20, 0.0  ;;  %v541_v24 = vmul.f32 %v811_v20, %v297_v19 }
 0x253   :  { %v534_v25 = vrot.slane %v533_v23, 4  ;;  %v526_v26 = vsel %vm132_vm0, %v813_v22, 0.0  ;;  %v540_v27 = vmul.f32 %v813_v22, %v292_v21 }
 0x254   :  { %v549_v28 = vsel %vm132_vm0, %v541_v24, 0.0  ;;  %v527_v29 = vrot.slane %v526_v26, 4 }
 0x255   :  { %v535_v30 = vadd.f32 %v534_v25, %v533_v23  ;;  %v550_v31 = vrot.slane %v549_v28, 4  ;;  %v542_v32 = vsel %vm132_vm0, %v540_v27, 0.0 }
 0x256   :  { %v528_v33 = vadd.f32 %v527_v29, %v526_v26  ;;  %v543_v34 = vrot.slane %v542_v32, 4 }
 0x257   :  { %v536_v35 = vrot.slane %v535_v30, 2  ;;  %v551_v37 = vadd.f32 %v550_v31, %v549_v28 }
 0x258   :  { %v529_v36 = vrot.slane %v528_v33, 2  ;;  %v544_v39 = vadd.f32 %v543_v34, %v542_v32 }
 0x259   :  { %v537_v38 = vadd.f32 %v536_v35, %v535_v30  ;;  %v552_v43 = vrot.slane %v551_v37, 2 }
 0x25a   :  { %v530_v40 = vadd.f32 %v529_v36, %v528_v33  ;;  %v545_v45 = vrot.slane %v544_v39, 2 }
 0x25b   :  { %v538_v41 = vrot.slane %v537_v38, 1  ;;  %v553_v47 = vadd.f32 %v552_v43, %v551_v37 }
 0x25c   :  { %v531_v42 = vrot.slane %v530_v40, 1  ;;  %v546_v48 = vadd.f32 %v545_v45, %v544_v39 }
 0x25d   :  { %v539_v44 = vadd.f32 %v538_v41, %v537_v38  ;;  %v554_v49 = vrot.slane %v553_v47, 1 }
 0x25e   :  { %v532_v46 = vadd.f32 %v531_v42, %v530_v40  ;;  %v547_v50 = vrot.slane %v546_v48, 1 }
 0x25f   :  { %814 = vrcp.f32 %v539_v44  ;;  %v555_v51 = vadd.f32 %v554_v49, %v553_v47 }
 0x260   :  { %816 = vrcp.f32 %v532_v46  ;;  %v548_v53 = vadd.f32 %v547_v50, %v546_v48 }
 0x269   :  { %v815_v52 = vpop.eup %814 }
 0x26a   :  { %v817_v54 = vpop.eup %816  ;;  %v559_v55 = vmul.f32 %v815_v52, %v555_v51 }
 0x26b   :  { %v558_v56 = vmul.f32 %v817_v54, %v548_v53 }
 0x26d   :  { %v574_v57 = vsel %vm573_vm2, %v559_v55, %v558_v56 }
 0x26e   :  { %759 = vmatmul.mubr.msk.f32.vlgmr.msra.gmra.mrb[4].mxu0 %vm132_vm0, %v574_v57 }
 0x341   :  { %v643_v59 = vpop.f32.mrb[4].mxu0 }
 0x342   :  { %v644_v60 = vadd.f32 %v676_v58, %v643_v59  ;;  %v760_v61 = vpop.f32.mrb[5].mxu0 }
 0x344   :  { %647 = vst [vmem:[#allocation13] sm:$0x3] %v644_v60 }
 0x345   :  { %961 = shalt.err (!%p958_p10)
}
 0x346   :  { %s962_s25 = scalar_lea.hbm %s1207_s11, 32 }
 0x347   :  { %p963_p11 = scmp.ne.s32.totalorder %s1207_s11, %s962_s25  ;;  %p966_p12 = scmp.lt.u32.totalorder %s962_s25, %s1207_s11 }
 0x349   :  { %p968_p13 = pnand %p966_p12, %p963_p11 }
 0x34b   :  { %971 = shalt.err (!%p968_p13)
}
 0x34c   :  { %657 = dma.vmem_to_hbm [thread:$0]  %s655_s23, 32, %s1207_s11, [#allocation4]  }
 0x34d   :  { %980 = dma.done.wait [#allocation4], 32  }
 0x34e   :  { %981 = vsyncadd [#allocation4], 4294967264 }
 0x34f   :  { %661 = vsyncpa [#allocation3], 1 }
 0x350   :  { %662 = vsyncpa [#allocation6], 1 }
 0x351   :  { %663 = vsyncpa [#allocation9], 1 }
 0x352   :  { %664 = vsyncpa [#allocation12], 1 }
 0x353   :  { %665 = vsyncpa [#allocation4], 1 }

</bundles_post_ra>
